<compile_context>
chip_gen: v5e
topology: v5e:2x2
jax: 0.10.0
libtpu: 0.0.40
codegen_flags: <defaults>
</compile_context>

<pallas_src>
import functools
import math

import jax
import jax.numpy as jnp
from jax import lax
from jax.experimental import pallas as pl
from jax.experimental.pallas import tpu as pltpu

C1 = 16        # conv1 output channels
C2 = 32        # conv2 output channels
H1 = 64        # fc1 hidden size
OUT_PAD = 128  # lane-padded fc2 output width (dense stores)


def _dot(a, b):
    # default MXU precision, f32 accumulation
    return jnp.dot(a, b, preferred_element_type=jnp.float32)


# ----------------------------------------------------------------------------
# Fused kernel: conv1 -> relu -> pool1 -> conv2 -> relu -> pool2 -> fc1 -> relu
#               -> (dropout: identity) -> fc2
# Activations live on (batch*position) sublanes x channel lanes.
# ----------------------------------------------------------------------------
def cnn_kernel(x_ref, w1m_ref, w1c_ref, w1p_ref, b1_ref,
               w2k_ref, b2_ref, wfc1_ref, bfc1_ref, wfc2_ref, bfc2_ref,
               out_ref, a2_s, *, L, BT):
    L2, L4 = L // 2, L // 4
    N2 = BT * L2

    # ---- conv1 (1->16,k3,p1) + relu + maxpool1(2,2), fused in registers -----
    # Row q of the even/odd streams belongs to sample b = q // L2 and covers
    # positions 2*(q % L2) and 2*(q % L2) + 1.  The +-1 conv taps come from the
    # opposite-parity stream via a one-row pltpu.roll, zeroed at sample edges.
    q = lax.broadcasted_iota(jnp.int32, (N2, 1), 0)
    pos_e = (2 * q) % L                                        # position of even row

    x_e = x_ref[pl.ds(0, N2, stride=2), :]                     # x[2q]     (N2, 1)
    x_o = x_ref[pl.ds(1, N2, stride=2), :]                     # x[2q+1]   (N2, 1)
    x_em1 = jnp.where(pos_e == 0, 0.0,
                      pltpu.roll(x_o, shift=1, axis=0))        # x[2q-1]
    x_op1 = jnp.where(pos_e == L - 2, 0.0,
                      pltpu.roll(x_e, shift=N2 - 1, axis=0))   # x[2q+2]

    w1m, w1c, w1p, b1 = w1m_ref[...], w1c_ref[...], w1p_ref[...], b1_ref[...]
    a1_e = x_em1 * w1m + x_e * w1c + x_o * w1p + b1            # conv1 @ even pos
    a1_o = x_e * w1m + x_o * w1c + x_op1 * w1p + b1            # conv1 @ odd pos
    p1 = jnp.maximum(jnp.maximum(a1_e, a1_o), 0.0)             # relu+pool1 (N2, C1)

    # ---- conv2 (16->32,k3,p1) + relu: 3 accumulated K=16 matmuls ------------
    pos2 = q % L2                                              # pooled position
    p1m = jnp.where(pos2 == 0, 0.0, pltpu.roll(p1, shift=1, axis=0))
    p1p = jnp.where(pos2 == L2 - 1, 0.0, pltpu.roll(p1, shift=N2 - 1, axis=0))
    a2 = (_dot(p1m, w2k_ref[0]) + _dot(p1, w2k_ref[1]) + _dot(p1p, w2k_ref[2])
          + b2_ref[...])
    a2_s[...] = jnp.maximum(a2, 0.0)                           # (N2, C2)

    # ---- maxpool2(2,2) fused with per-position fc1 accumulation -------------
    # torch's channel-major flatten is folded into the per-position fc1 weight
    # slices (done at trace time), so no flattened feature slab is built.
    h = jnp.zeros((BT, H1), jnp.float32)
    for l in range(L4):   # small & unrolled; MXU is nearly idle anyway
        p2_l = jnp.maximum(a2_s[pl.ds(2 * l, BT, stride=L2), :],
                           a2_s[pl.ds(2 * l + 1, BT, stride=L2), :])   # (BT, C2)
        h = h + _dot(p2_l, wfc1_ref[l])
    h = jnp.maximum(h + bfc1_ref[...], 0.0)                    # fc1 + relu (BT, H1)

    # ---- dropout (identity at inference) + fc2 into a dense 128-lane slab ---
    out_ref[...] = _dot(h, wfc2_ref[...]) + bfc2_ref[...]      # (BT, 128)


# ----------------------------------------------------------------------------
# Padding-aware tile sizing
# ----------------------------------------------------------------------------
def _vmem_step_bytes(bt, L):
    # (8,128)-tile accounting: an f32 row of any ref with minor dim < 128
    # occupies 512 B of VMEM regardless of its logical width.
    row = 512
    x_blk = 2 * bt * L * row          # (bt*L, 1) input block, double-buffered
    a2_scr = bt * (L // 2) * row      # conv2 activation scratch
    out_blk = 2 * bt * row            # (bt, 128) output block, double-buffered
    weights = 1 << 20                 # all weight operands, generous bound
    return x_blk + a2_scr + out_blk + weights


def _pick_batch_tile(B, L, vmem_budget_bytes):
    candidates = [bt for bt in (1024, 512, 256, 128, 64, 32, 16, 8)
                  if bt <= B and B % bt == 0
                  and _vmem_step_bytes(bt, L) <= vmem_budget_bytes]
    # Prefer the largest tile that still leaves >= 2 grid steps so the
    # "parallel" grid axis can shard across v7x's two TensorCores.
    for bt in candidates:
        if B // bt >= 2:
            return bt
    if candidates:
        return candidates[0]
    # Tiny/awkward batches (B < 8 or no multiple-of-8 divisor): a single
    # full-batch block is the only legal sublane tiling.
    return B


# ----------------------------------------------------------------------------
# Wrapper
# ----------------------------------------------------------------------------
def cnn_forward(x, params, *, batch_tile=None, vmem_budget_bytes=24 << 20):
    w1, b1, w2, b2, wfc1, bfc1, wfc2, bfc2 = params
    B, L = x.shape
    assert L % 4 == 0, "input_dim must be divisible by 4 (two stride-2 pools)"
    L4 = L // 4
    bt = batch_tile or _pick_batch_tile(B, L, vmem_budget_bytes)
    assert B % bt == 0

    f32 = jnp.float32
    # --- trace-time parameter layout prep (one-off, folded into weights) ----
    x2d = x.reshape(B * L, 1).astype(f32)
    w1m = w1[:, 0, 0].reshape(1, C1).astype(f32)   # tap multiplying x[l-1]
    w1c = w1[:, 0, 1].reshape(1, C1).astype(f32)   # tap multiplying x[l]
    w1p = w1[:, 0, 2].reshape(1, C1).astype(f32)   # tap multiplying x[l+1]
    b1r = b1.reshape(1, C1).astype(f32)
    # conv2 per-tap operands: w2k[k, c1, c2] = w2[c2, c1, k]
    w2k = jnp.transpose(w2, (2, 1, 0)).astype(f32)                       # (3, C1, C2)
    b2r = b2.reshape(1, C2).astype(f32)
    # torch flatten is channel-major (c*L4 + l); fold that permutation into fc1
    # and split into per-position (C2, H1) slices for the accumulated dots.
    wfc1s = jnp.transpose(wfc1.reshape(H1, C2, L4), (2, 1, 0)).astype(f32)  # (L4,C2,H1)
    bfc1r = bfc1.reshape(1, H1).astype(f32)
    # lane-pad fc2 so the final store is a dense 128-lane slab
    wfc2p = jnp.zeros((H1, OUT_PAD), f32).at[:, 0].set(wfc2[0].astype(f32))
    bfc2p = jnp.zeros((1, OUT_PAD), f32).at[0, 0].set(bfc2[0].astype(f32))

    grid = (B // bt,)
    kernel = functools.partial(cnn_kernel, L=L, BT=bt)
    vmem_limit = int(min(max(_vmem_step_bytes(bt, L) + (8 << 20), 32 << 20), 100 << 20))

    out_pad = pl.pallas_call(
        kernel,
        out_shape=jax.ShapeDtypeStruct((B, OUT_PAD), f32),
        grid=grid,
        in_specs=[
            pl.BlockSpec((bt * L, 1), lambda i: (i, 0)),
            pl.BlockSpec((1, C1), lambda i: (0, 0)),
            pl.BlockSpec((1, C1), lambda i: (0, 0)),
            pl.BlockSpec((1, C1), lambda i: (0, 0)),
            pl.BlockSpec((1, C1), lambda i: (0, 0)),
            pl.BlockSpec((3, C1, C2), lambda i: (0, 0, 0)),
            pl.BlockSpec((1, C2), lambda i: (0, 0)),
            pl.BlockSpec((L4, C2, H1), lambda i: (0, 0, 0)),
            pl.BlockSpec((1, H1), lambda i: (0, 0)),
            pl.BlockSpec((H1, OUT_PAD), lambda i: (0, 0)),
            pl.BlockSpec((1, OUT_PAD), lambda i: (0, 0)),
        ],
        out_specs=pl.BlockSpec((bt, OUT_PAD), lambda i: (i, 0)),
        scratch_shapes=[pltpu.VMEM((bt * L // 2, C2), f32)],   # relu(conv2) only
        compiler_params=pltpu.CompilerParams(
            dimension_semantics=("parallel",),                 # 2 TCs on v7x
            vmem_limit_bytes=vmem_limit,
        ),
    )(x2d, w1m, w1c, w1p, b1r, w2k, b2r, wfc1s, bfc1r, wfc2p, bfc2p)

    return out_pad[:, :1]


# ----------------------------------------------------------------------------
# Pure-JAX reference (verification baseline, full precision)
# ----------------------------------------------------------------------------
def cnn_reference(x, params):
    w1, b1, w2, b2, wfc1, bfc1, wfc2, bfc2 = params
    B, L = x.shape
    hp = lax.Precision.HIGHEST
    h = x[:, None, :]
    h = lax.conv_general_dilated(h, w1, (1,), [(1, 1)],
                                 dimension_numbers=('NCH', 'OIH', 'NCH'),
                                 precision=hp)
    h = jax.nn.relu(h + b1[None, :, None])
    h = h.reshape(B, 16, L // 2, 2).max(-1)
    h = lax.conv_general_dilated(h, w2, (1,), [(1, 1)],
                                 dimension_numbers=('NCH', 'OIH', 'NCH'),
                                 precision=hp)
    h = jax.nn.relu(h + b2[None, :, None])
    h = h.reshape(B, 32, L // 4, 2).max(-1)
    h = h.reshape(B, -1)
    h = jax.nn.relu(jnp.dot(h, wfc1.T, precision=hp) + bfc1)
    return jnp.dot(h, wfc2.T, precision=hp) + bfc2


def init_params(key, input_dim):
    out_dim = input_dim // 4 * 32
    ks = jax.random.split(key, 8)

    def u(k, shape, fan_in):
        b = 1.0 / math.sqrt(fan_in)
        return jax.random.uniform(k, shape, jnp.float32, -b, b)

    w1 = u(ks[0], (16, 1, 3), 3)
    b1 = u(ks[1], (16,), 3)
    w2 = u(ks[2], (32, 16, 3), 16 * 3)
    b2 = u(ks[3], (32,), 16 * 3)
    wfc1 = u(ks[4], (64, out_dim), out_dim)
    bfc1 = u(ks[5], (64,), out_dim)
    wfc2 = u(ks[6], (1, 64), 64)
    bfc2 = u(ks[7], (1,), 64)
    return (w1, b1, w2, b2, wfc1, bfc1, wfc2, bfc2)


if __name__ == "__main__":
    B, input_dim = 2, 16                      # flatten dim = 16 // 4 * 32 = 128
    key = jax.random.PRNGKey(0)
    pkey, xkey = jax.random.split(key)
    params = init_params(pkey, input_dim)
    x = jax.random.normal(xkey, (B, input_dim), jnp.float32)

    out = cnn_forward(x, params)
    out = jax.block_until_ready(out)

    ref = cnn_reference(x, params)
    assert out.shape == (B, 1)
    # Kernel matmuls run at default MXU precision on f32 inputs, so allow a
    # bf16-pass level error vs. the full-precision reference.
    assert jnp.allclose(out, ref, atol=5e-3, rtol=5e-3), (out, ref)
    print("KERNEL_OK")
</pallas_src>

<mosaic_0001>
module attributes {stable_mosaic.version = 11 : i64} {
  func.func @cnn_kernel(%arg0: i32, %arg1: memref<32x1xf32, #tpu.memory_space<vmem>>, %arg2: memref<1x16xf32, #tpu.memory_space<vmem>>, %arg3: memref<1x16xf32, #tpu.memory_space<vmem>>, %arg4: memref<1x16xf32, #tpu.memory_space<vmem>>, %arg5: memref<1x16xf32, #tpu.memory_space<vmem>>, %arg6: memref<3x16x32xf32, #tpu.memory_space<vmem>>, %arg7: memref<1x32xf32, #tpu.memory_space<vmem>>, %arg8: memref<4x32x64xf32, #tpu.memory_space<vmem>>, %arg9: memref<1x64xf32, #tpu.memory_space<vmem>>, %arg10: memref<64x128xf32, #tpu.memory_space<vmem>>, %arg11: memref<1x128xf32, #tpu.memory_space<vmem>>, %arg12: memref<2x128xf32, #tpu.memory_space<vmem>>, %arg13: memref<16x32xf32, #tpu.memory_space<vmem>>) attributes {dimension_semantics = [#tpu.dimension_semantics<parallel>], iteration_bounds = array<i64: 1>, scalar_prefetch = 0 : i64, scratch_operands = 1 : i64, tpu.core_type = #tpu.core_type<tc>, window_params = [{transform_indices = @transform_0, window_bounds = array<i64: 32, 1>}, {pipeline_mode = #tpu.pipeline_mode<synchronous>, transform_indices = @transform_1, window_bounds = array<i64: 1, 16>}, {pipeline_mode = #tpu.pipeline_mode<synchronous>, transform_indices = @transform_2, window_bounds = array<i64: 1, 16>}, {pipeline_mode = #tpu.pipeline_mode<synchronous>, transform_indices = @transform_3, window_bounds = array<i64: 1, 16>}, {pipeline_mode = #tpu.pipeline_mode<synchronous>, transform_indices = @transform_4, window_bounds = array<i64: 1, 16>}, {pipeline_mode = #tpu.pipeline_mode<synchronous>, transform_indices = @transform_5, window_bounds = array<i64: 3, 16, 32>}, {pipeline_mode = #tpu.pipeline_mode<synchronous>, transform_indices = @transform_6, window_bounds = array<i64: 1, 32>}, {pipeline_mode = #tpu.pipeline_mode<synchronous>, transform_indices = @transform_7, window_bounds = array<i64: 4, 32, 64>}, {pipeline_mode = #tpu.pipeline_mode<synchronous>, transform_indices = @transform_8, window_bounds = array<i64: 1, 64>}, {pipeline_mode = #tpu.pipeline_mode<synchronous>, transform_indices = @transform_9, window_bounds = array<i64: 64, 128>}, {pipeline_mode = #tpu.pipeline_mode<synchronous>, transform_indices = @transform_10, window_bounds = array<i64: 1, 128>}, {transform_indices = @transform_11, window_bounds = array<i64: 2, 128>}]} {
    %0 = tpu.iota {dimensions = array<i32: 0>} : vector<16x1xi32>
    %c2_i32 = arith.constant 2 : i32
    %1 = vector.broadcast %c2_i32 : i32 to vector<16x1xi32>
    %2 = arith.muli %1, %0 : vector<16x1xi32>
    %c16_i32 = arith.constant 16 : i32
    %c0_i32 = arith.constant 0 : i32
    %3 = arith.cmpi eq, %c16_i32, %c0_i32 : i32
    %c1_i32 = arith.constant 1 : i32
    %4 = arith.select %3, %c1_i32, %c16_i32 : i32
    %5 = vector.broadcast %4 : i32 to vector<16x1xi32>
    %6 = arith.remsi %2, %5 : vector<16x1xi32>
    %c0_i32_0 = arith.constant 0 : i32
    %7 = vector.broadcast %c0_i32_0 : i32 to vector<16x1xi32>
    %8 = arith.cmpi ne, %6, %7 : vector<16x1xi32>
    %c0_i32_1 = arith.constant 0 : i32
    %9 = vector.broadcast %c0_i32_1 : i32 to vector<16x1xi32>
    %10 = arith.cmpi slt, %6, %9 : vector<16x1xi32>
    %c0_i32_2 = arith.constant 0 : i32
    %11 = arith.cmpi slt, %4, %c0_i32_2 : i32
    %12 = vector.broadcast %11 : i1 to vector<16x1xi1>
    %13 = vector.broadcast %12 : vector<16x1xi1> to vector<16x1xi1>
    %14 = arith.xori %10, %13 : vector<16x1xi1>
    %15 = arith.andi %14, %8 : vector<16x1xi1>
    %16 = vector.broadcast %4 : i32 to vector<16x1xi32>
    %17 = arith.addi %6, %16 : vector<16x1xi32>
    %18 = arith.select %15, %17, %6 : vector<16x1xi1>, vector<16x1xi32>
    %c0 = arith.constant 0 : index
    %c0_3 = arith.constant 0 : index
    %19 = tpu.strided_load %arg1[%c0, %c0_3] {strides = array<i32: 2, 1>} : memref<32x1xf32, #tpu.memory_space<vmem>>, vector<16x1xf32>
    %c1 = arith.constant 1 : index
    %c0_4 = arith.constant 0 : index
    %20 = tpu.strided_load %arg1[%c1, %c0_4] {strides = array<i32: 2, 1>} : memref<32x1xf32, #tpu.memory_space<vmem>>, vector<16x1xf32>
    %c0_i32_5 = arith.constant 0 : i32
    %21 = vector.broadcast %c0_i32_5 : i32 to vector<16x1xi32>
    %22 = arith.cmpi eq, %18, %21 : vector<16x1xi32>
    %c1_i32_6 = arith.constant 1 : i32
    %23 = tpu.dynamic_rotate %20 by %c1_i32_6 dim 0 : vector<16x1xf32>, i32 -> vector<16x1xf32>
    %cst = arith.constant 0.000000e+00 : f32
    %24 = vector.broadcast %cst : f32 to vector<16x1xf32>
    %25 = arith.select %22, %24, %23 : vector<16x1xi1>, vector<16x1xf32>
    %c14_i32 = arith.constant 14 : i32
    %26 = vector.broadcast %c14_i32 : i32 to vector<16x1xi32>
    %27 = arith.cmpi eq, %18, %26 : vector<16x1xi32>
    %c15_i32 = arith.constant 15 : i32
    %28 = tpu.dynamic_rotate %19 by %c15_i32 dim 0 : vector<16x1xf32>, i32 -> vector<16x1xf32>
    %cst_7 = arith.constant 0.000000e+00 : f32
    %29 = vector.broadcast %cst_7 : f32 to vector<16x1xf32>
    %30 = arith.select %27, %29, %28 : vector<16x1xi1>, vector<16x1xf32>
    %c0_8 = arith.constant 0 : index
    %c0_9 = arith.constant 0 : index
    %31 = vector.load %arg2[%c0_8, %c0_9] : memref<1x16xf32, #tpu.memory_space<vmem>>, vector<1x16xf32>
    %c0_10 = arith.constant 0 : index
    %c0_11 = arith.constant 0 : index
    %32 = vector.load %arg3[%c0_10, %c0_11] : memref<1x16xf32, #tpu.memory_space<vmem>>, vector<1x16xf32>
    %c0_12 = arith.constant 0 : index
    %c0_13 = arith.constant 0 : index
    %33 = vector.load %arg4[%c0_12, %c0_13] : memref<1x16xf32, #tpu.memory_space<vmem>>, vector<1x16xf32>
    %c0_14 = arith.constant 0 : index
    %c0_15 = arith.constant 0 : index
    %34 = vector.load %arg5[%c0_14, %c0_15] : memref<1x16xf32, #tpu.memory_space<vmem>>, vector<1x16xf32>
    %35 = vector.broadcast %25 : vector<16x1xf32> to vector<16x16xf32>
    %36 = vector.broadcast %31 : vector<1x16xf32> to vector<16x16xf32>
    %37 = arith.mulf %35, %36 : vector<16x16xf32>
    %38 = vector.broadcast %19 : vector<16x1xf32> to vector<16x16xf32>
    %39 = vector.broadcast %32 : vector<1x16xf32> to vector<16x16xf32>
    %40 = arith.mulf %38, %39 : vector<16x16xf32>
    %41 = arith.addf %37, %40 : vector<16x16xf32>
    %42 = vector.broadcast %20 : vector<16x1xf32> to vector<16x16xf32>
    %43 = vector.broadcast %33 : vector<1x16xf32> to vector<16x16xf32>
    %44 = arith.mulf %42, %43 : vector<16x16xf32>
    %45 = arith.addf %41, %44 : vector<16x16xf32>
    %46 = vector.broadcast %34 : vector<1x16xf32> to vector<16x16xf32>
    %47 = arith.addf %45, %46 : vector<16x16xf32>
    %48 = vector.broadcast %19 : vector<16x1xf32> to vector<16x16xf32>
    %49 = vector.broadcast %31 : vector<1x16xf32> to vector<16x16xf32>
    %50 = arith.mulf %48, %49 : vector<16x16xf32>
    %51 = vector.broadcast %20 : vector<16x1xf32> to vector<16x16xf32>
    %52 = vector.broadcast %32 : vector<1x16xf32> to vector<16x16xf32>
    %53 = arith.mulf %51, %52 : vector<16x16xf32>
    %54 = arith.addf %50, %53 : vector<16x16xf32>
    %55 = vector.broadcast %30 : vector<16x1xf32> to vector<16x16xf32>
    %56 = vector.broadcast %33 : vector<1x16xf32> to vector<16x16xf32>
    %57 = arith.mulf %55, %56 : vector<16x16xf32>
    %58 = arith.addf %54, %57 : vector<16x16xf32>
    %59 = vector.broadcast %34 : vector<1x16xf32> to vector<16x16xf32>
    %60 = arith.addf %58, %59 : vector<16x16xf32>
    %61 = arith.maximumf %47, %60 : vector<16x16xf32>
    %cst_16 = arith.constant 0.000000e+00 : f32
    %62 = vector.broadcast %cst_16 : f32 to vector<16x16xf32>
    %63 = arith.maximumf %61, %62 : vector<16x16xf32>
    %c8_i32 = arith.constant 8 : i32
    %c0_i32_17 = arith.constant 0 : i32
    %64 = arith.cmpi eq, %c8_i32, %c0_i32_17 : i32
    %c1_i32_18 = arith.constant 1 : i32
    %65 = arith.select %64, %c1_i32_18, %c8_i32 : i32
    %66 = vector.broadcast %65 : i32 to vector<16x1xi32>
    %67 = arith.remsi %0, %66 : vector<16x1xi32>
    %c0_i32_19 = arith.constant 0 : i32
    %68 = vector.broadcast %c0_i32_19 : i32 to vector<16x1xi32>
    %69 = arith.cmpi ne, %67, %68 : vector<16x1xi32>
    %c0_i32_20 = arith.constant 0 : i32
    %70 = vector.broadcast %c0_i32_20 : i32 to vector<16x1xi32>
    %71 = arith.cmpi slt, %67, %70 : vector<16x1xi32>
    %c0_i32_21 = arith.constant 0 : i32
    %72 = arith.cmpi slt, %65, %c0_i32_21 : i32
    %73 = vector.broadcast %72 : i1 to vector<16x1xi1>
    %74 = vector.broadcast %73 : vector<16x1xi1> to vector<16x1xi1>
    %75 = arith.xori %71, %74 : vector<16x1xi1>
    %76 = arith.andi %75, %69 : vector<16x1xi1>
    %77 = vector.broadcast %65 : i32 to vector<16x1xi32>
    %78 = arith.addi %67, %77 : vector<16x1xi32>
    %79 = arith.select %76, %78, %67 : vector<16x1xi1>, vector<16x1xi32>
    %c0_i32_22 = arith.constant 0 : i32
    %80 = vector.broadcast %c0_i32_22 : i32 to vector<16x1xi32>
    %81 = arith.cmpi eq, %79, %80 : vector<16x1xi32>
    %c1_i32_23 = arith.constant 1 : i32
    %82 = tpu.dynamic_rotate %63 by %c1_i32_23 dim 0 : vector<16x16xf32>, i32 -> vector<16x16xf32>
    %cst_24 = arith.constant 0.000000e+00 : f32
    %83 = vector.shape_cast %81 : vector<16x1xi1> to vector<16x1xi1>
    %84 = vector.broadcast %83 : vector<16x1xi1> to vector<16x16xi1>
    %85 = vector.broadcast %cst_24 : f32 to vector<16x16xf32>
    %86 = arith.select %84, %85, %82 : vector<16x16xi1>, vector<16x16xf32>
    %c7_i32 = arith.constant 7 : i32
    %87 = vector.broadcast %c7_i32 : i32 to vector<16x1xi32>
    %88 = arith.cmpi eq, %79, %87 : vector<16x1xi32>
    %c15_i32_25 = arith.constant 15 : i32
    %89 = tpu.dynamic_rotate %63 by %c15_i32_25 dim 0 : vector<16x16xf32>, i32 -> vector<16x16xf32>
    %cst_26 = arith.constant 0.000000e+00 : f32
    %90 = vector.shape_cast %88 : vector<16x1xi1> to vector<16x1xi1>
    %91 = vector.broadcast %90 : vector<16x1xi1> to vector<16x16xi1>
    %92 = vector.broadcast %cst_26 : f32 to vector<16x16xf32>
    %93 = arith.select %91, %92, %89 : vector<16x16xi1>, vector<16x16xf32>
    %c0_27 = arith.constant 0 : index
    %c0_28 = arith.constant 0 : index
    %c0_29 = arith.constant 0 : index
    %94 = vector.load %arg6[%c0_27, %c0_28, %c0_29] : memref<3x16x32xf32, #tpu.memory_space<vmem>>, vector<1x16x32xf32>
    %95 = vector.shape_cast %94 : vector<1x16x32xf32> to vector<16x32xf32>
    %cst_30 = arith.constant dense<0.000000e+00> : vector<16x32xf32>
    %96 = tpu.matmul %86, %95, %cst_30 {dimension_numbers = #tpu.dot_dimension_numbers<[1], [0], [0], [1], [0, 0, 1, 1], [], []>} : vector<16x16xf32>, vector<16x32xf32>, vector<16x32xf32> -> vector<16x32xf32>
    %c1_31 = arith.constant 1 : index
    %c0_32 = arith.constant 0 : index
    %c0_33 = arith.constant 0 : index
    %97 = vector.load %arg6[%c1_31, %c0_32, %c0_33] : memref<3x16x32xf32, #tpu.memory_space<vmem>>, vector<1x16x32xf32>
    %98 = vector.shape_cast %97 : vector<1x16x32xf32> to vector<16x32xf32>
    %cst_34 = arith.constant dense<0.000000e+00> : vector<16x32xf32>
    %99 = tpu.matmul %63, %98, %cst_34 {dimension_numbers = #tpu.dot_dimension_numbers<[1], [0], [0], [1], [0, 0, 1, 1], [], []>} : vector<16x16xf32>, vector<16x32xf32>, vector<16x32xf32> -> vector<16x32xf32>
    %100 = arith.addf %96, %99 : vector<16x32xf32>
    %c2 = arith.constant 2 : index
    %c0_35 = arith.constant 0 : index
    %c0_36 = arith.constant 0 : index
    %101 = vector.load %arg6[%c2, %c0_35, %c0_36] : memref<3x16x32xf32, #tpu.memory_space<vmem>>, vector<1x16x32xf32>
    %102 = vector.shape_cast %101 : vector<1x16x32xf32> to vector<16x32xf32>
    %cst_37 = arith.constant dense<0.000000e+00> : vector<16x32xf32>
    %103 = tpu.matmul %93, %102, %cst_37 {dimension_numbers = #tpu.dot_dimension_numbers<[1], [0], [0], [1], [0, 0, 1, 1], [], []>} : vector<16x16xf32>, vector<16x32xf32>, vector<16x32xf32> -> vector<16x32xf32>
    %104 = arith.addf %100, %103 : vector<16x32xf32>
    %c0_38 = arith.constant 0 : index
    %c0_39 = arith.constant 0 : index
    %105 = vector.load %arg7[%c0_38, %c0_39] : memref<1x32xf32, #tpu.memory_space<vmem>>, vector<1x32xf32>
    %106 = vector.broadcast %105 : vector<1x32xf32> to vector<16x32xf32>
    %107 = arith.addf %104, %106 : vector<16x32xf32>
    %cst_40 = arith.constant 0.000000e+00 : f32
    %108 = vector.broadcast %cst_40 : f32 to vector<16x32xf32>
    %109 = arith.maximumf %107, %108 : vector<16x32xf32>
    %c0_41 = arith.constant 0 : index
    %c0_42 = arith.constant 0 : index
    %110 = vector.load %arg13[%c0_41, %c0_42] : memref<16x32xf32, #tpu.memory_space<vmem>>, vector<16x32xf32>
    tpu.vector_store %arg13[%c0_41, %c0_42], %109 {strides = array<i32>} : memref<16x32xf32, #tpu.memory_space<vmem>>, vector<16x32xf32>,
    %cst_43 = arith.constant 0.000000e+00 : f32
    %111 = vector.broadcast %cst_43 : f32 to vector<2x64xf32>
    %c0_44 = arith.constant 0 : index
    %c0_45 = arith.constant 0 : index
    %112 = tpu.strided_load %arg13[%c0_44, %c0_45] {strides = array<i32: 8, 1>} : memref<16x32xf32, #tpu.memory_space<vmem>>, vector<2x32xf32>
    %c1_46 = arith.constant 1 : index
    %c0_47 = arith.constant 0 : index
    %113 = tpu.strided_load %arg13[%c1_46, %c0_47] {strides = array<i32: 8, 1>} : memref<16x32xf32, #tpu.memory_space<vmem>>, vector<2x32xf32>
    %114 = arith.maximumf %112, %113 : vector<2x32xf32>
    %c0_48 = arith.constant 0 : index
    %c0_49 = arith.constant 0 : index
    %c0_50 = arith.constant 0 : index
    %115 = vector.load %arg8[%c0_48, %c0_49, %c0_50] : memref<4x32x64xf32, #tpu.memory_space<vmem>>, vector<1x32x64xf32>
    %116 = vector.shape_cast %115 : vector<1x32x64xf32> to vector<32x64xf32>
    %cst_51 = arith.constant dense<0.000000e+00> : vector<2x64xf32>
    %117 = tpu.matmul %114, %116, %cst_51 {dimension_numbers = #tpu.dot_dimension_numbers<[1], [0], [0], [1], [0, 0, 1, 1], [], []>} : vector<2x32xf32>, vector<32x64xf32>, vector<2x64xf32> -> vector<2x64xf32>
    %118 = arith.addf %111, %117 : vector<2x64xf32>
    %c2_52 = arith.constant 2 : index
    %c0_53 = arith.constant 0 : index
    %119 = tpu.strided_load %arg13[%c2_52, %c0_53] {strides = array<i32: 8, 1>} : memref<16x32xf32, #tpu.memory_space<vmem>>, vector<2x32xf32>
    %c3 = arith.constant 3 : index
    %c0_54 = arith.constant 0 : index
    %120 = tpu.strided_load %arg13[%c3, %c0_54] {strides = array<i32: 8, 1>} : memref<16x32xf32, #tpu.memory_space<vmem>>, vector<2x32xf32>
    %121 = arith.maximumf %119, %120 : vector<2x32xf32>
    %c1_55 = arith.constant 1 : index
    %c0_56 = arith.constant 0 : index
    %c0_57 = arith.constant 0 : index
    %122 = vector.load %arg8[%c1_55, %c0_56, %c0_57] : memref<4x32x64xf32, #tpu.memory_space<vmem>>, vector<1x32x64xf32>
    %123 = vector.shape_cast %122 : vector<1x32x64xf32> to vector<32x64xf32>
    %cst_58 = arith.constant dense<0.000000e+00> : vector<2x64xf32>
    %124 = tpu.matmul %121, %123, %cst_58 {dimension_numbers = #tpu.dot_dimension_numbers<[1], [0], [0], [1], [0, 0, 1, 1], [], []>} : vector<2x32xf32>, vector<32x64xf32>, vector<2x64xf32> -> vector<2x64xf32>
    %125 = arith.addf %118, %124 : vector<2x64xf32>
    %c4 = arith.constant 4 : index
    %c0_59 = arith.constant 0 : index
    %126 = tpu.strided_load %arg13[%c4, %c0_59] {strides = array<i32: 8, 1>} : memref<16x32xf32, #tpu.memory_space<vmem>>, vector<2x32xf32>
    %c5 = arith.constant 5 : index
    %c0_60 = arith.constant 0 : index
    %127 = tpu.strided_load %arg13[%c5, %c0_60] {strides = array<i32: 8, 1>} : memref<16x32xf32, #tpu.memory_space<vmem>>, vector<2x32xf32>
    %128 = arith.maximumf %126, %127 : vector<2x32xf32>
    %c2_61 = arith.constant 2 : index
    %c0_62 = arith.constant 0 : index
    %c0_63 = arith.constant 0 : index
    %129 = vector.load %arg8[%c2_61, %c0_62, %c0_63] : memref<4x32x64xf32, #tpu.memory_space<vmem>>, vector<1x32x64xf32>
    %130 = vector.shape_cast %129 : vector<1x32x64xf32> to vector<32x64xf32>
    %cst_64 = arith.constant dense<0.000000e+00> : vector<2x64xf32>
    %131 = tpu.matmul %128, %130, %cst_64 {dimension_numbers = #tpu.dot_dimension_numbers<[1], [0], [0], [1], [0, 0, 1, 1], [], []>} : vector<2x32xf32>, vector<32x64xf32>, vector<2x64xf32> -> vector<2x64xf32>
    %132 = arith.addf %125, %131 : vector<2x64xf32>
    %c6 = arith.constant 6 : index
    %c0_65 = arith.constant 0 : index
    %133 = tpu.strided_load %arg13[%c6, %c0_65] {strides = array<i32: 8, 1>} : memref<16x32xf32, #tpu.memory_space<vmem>>, vector<2x32xf32>
    %c7 = arith.constant 7 : index
    %c0_66 = arith.constant 0 : index
    %134 = tpu.strided_load %arg13[%c7, %c0_66] {strides = array<i32: 8, 1>} : memref<16x32xf32, #tpu.memory_space<vmem>>, vector<2x32xf32>
    %135 = arith.maximumf %133, %134 : vector<2x32xf32>
    %c3_67 = arith.constant 3 : index
    %c0_68 = arith.constant 0 : index
    %c0_69 = arith.constant 0 : index
    %136 = vector.load %arg8[%c3_67, %c0_68, %c0_69] : memref<4x32x64xf32, #tpu.memory_space<vmem>>, vector<1x32x64xf32>
    %137 = vector.shape_cast %136 : vector<1x32x64xf32> to vector<32x64xf32>
    %cst_70 = arith.constant dense<0.000000e+00> : vector<2x64xf32>
    %138 = tpu.matmul %135, %137, %cst_70 {dimension_numbers = #tpu.dot_dimension_numbers<[1], [0], [0], [1], [0, 0, 1, 1], [], []>} : vector<2x32xf32>, vector<32x64xf32>, vector<2x64xf32> -> vector<2x64xf32>
    %139 = arith.addf %132, %138 : vector<2x64xf32>
    %c0_71 = arith.constant 0 : index
    %c0_72 = arith.constant 0 : index
    %140 = vector.load %arg9[%c0_71, %c0_72] : memref<1x64xf32, #tpu.memory_space<vmem>>, vector<1x64xf32>
    %141 = vector.broadcast %140 : vector<1x64xf32> to vector<2x64xf32>
    %142 = arith.addf %139, %141 : vector<2x64xf32>
    %cst_73 = arith.constant 0.000000e+00 : f32
    %143 = vector.broadcast %cst_73 : f32 to vector<2x64xf32>
    %144 = arith.maximumf %142, %143 : vector<2x64xf32>
    %c0_74 = arith.constant 0 : index
    %c0_75 = arith.constant 0 : index
    %145 = vector.load %arg10[%c0_74, %c0_75] : memref<64x128xf32, #tpu.memory_space<vmem>>, vector<64x128xf32>
    %cst_76 = arith.constant dense<0.000000e+00> : vector<2x128xf32>
    %146 = tpu.matmul %144, %145, %cst_76 {dimension_numbers = #tpu.dot_dimension_numbers<[1], [0], [0], [1], [0, 0, 1, 1], [], []>} : vector<2x64xf32>, vector<64x128xf32>, vector<2x128xf32> -> vector<2x128xf32>
    %c0_77 = arith.constant 0 : index
    %c0_78 = arith.constant 0 : index
    %147 = vector.load %arg11[%c0_77, %c0_78] : memref<1x128xf32, #tpu.memory_space<vmem>>, vector<1x128xf32>
    %148 = vector.broadcast %147 : vector<1x128xf32> to vector<2x128xf32>
    %149 = arith.addf %146, %148 : vector<2x128xf32>
    %c0_79 = arith.constant 0 : index
    %c0_80 = arith.constant 0 : index
    %150 = vector.load %arg12[%c0_79, %c0_80] : memref<2x128xf32, #tpu.memory_space<vmem>>, vector<2x128xf32>
    tpu.vector_store %arg12[%c0_79, %c0_80], %149 {strides = array<i32>} : memref<2x128xf32, #tpu.memory_space<vmem>>, vector<2x128xf32>,
    return
  }
  func.func @transform_0(%arg0: i32) -> (i32, i32) {
    %c0_i32 = arith.constant 0 : i32
    %c0_i32_0 = arith.constant 0 : i32
    return %arg0, %c0_i32 : i32, i32
  }
  func.func @transform_1(%arg0: i32) -> (i32, i32) {
    %c0_i32 = arith.constant 0 : i32
    %c0_i32_0 = arith.constant 0 : i32
    %c0_i32_1 = arith.constant 0 : i32
    return %c0_i32, %c0_i32_0 : i32, i32
  }
  func.func @transform_2(%arg0: i32) -> (i32, i32) {
    %c0_i32 = arith.constant 0 : i32
    %c0_i32_0 = arith.constant 0 : i32
    %c0_i32_1 = arith.constant 0 : i32
    return %c0_i32, %c0_i32_0 : i32, i32
  }
  func.func @transform_3(%arg0: i32) -> (i32, i32) {
    %c0_i32 = arith.constant 0 : i32
    %c0_i32_0 = arith.constant 0 : i32
    %c0_i32_1 = arith.constant 0 : i32
    return %c0_i32, %c0_i32_0 : i32, i32
  }
  func.func @transform_4(%arg0: i32) -> (i32, i32) {
    %c0_i32 = arith.constant 0 : i32
    %c0_i32_0 = arith.constant 0 : i32
    %c0_i32_1 = arith.constant 0 : i32
    return %c0_i32, %c0_i32_0 : i32, i32
  }
  func.func @transform_5(%arg0: i32) -> (i32, i32, i32) {
    %c0_i32 = arith.constant 0 : i32
    %c0_i32_0 = arith.constant 0 : i32
    %c0_i32_1 = arith.constant 0 : i32
    %c0_i32_2 = arith.constant 0 : i32
    return %c0_i32, %c0_i32_0, %c0_i32_1 : i32, i32, i32
  }
  func.func @transform_6(%arg0: i32) -> (i32, i32) {
    %c0_i32 = arith.constant 0 : i32
    %c0_i32_0 = arith.constant 0 : i32
    %c0_i32_1 = arith.constant 0 : i32
    return %c0_i32, %c0_i32_0 : i32, i32
  }
  func.func @transform_7(%arg0: i32) -> (i32, i32, i32) {
    %c0_i32 = arith.constant 0 : i32
    %c0_i32_0 = arith.constant 0 : i32
    %c0_i32_1 = arith.constant 0 : i32
    %c0_i32_2 = arith.constant 0 : i32
    return %c0_i32, %c0_i32_0, %c0_i32_1 : i32, i32, i32
  }
  func.func @transform_8(%arg0: i32) -> (i32, i32) {
    %c0_i32 = arith.constant 0 : i32
    %c0_i32_0 = arith.constant 0 : i32
    %c0_i32_1 = arith.constant 0 : i32
    return %c0_i32, %c0_i32_0 : i32, i32
  }
  func.func @transform_9(%arg0: i32) -> (i32, i32) {
    %c0_i32 = arith.constant 0 : i32
    %c0_i32_0 = arith.constant 0 : i32
    %c0_i32_1 = arith.constant 0 : i32
    return %c0_i32, %c0_i32_0 : i32, i32
  }
  func.func @transform_10(%arg0: i32) -> (i32, i32) {
    %c0_i32 = arith.constant 0 : i32
    %c0_i32_0 = arith.constant 0 : i32
    %c0_i32_1 = arith.constant 0 : i32
    return %c0_i32, %c0_i32_0 : i32, i32
  }
  func.func @transform_11(%arg0: i32) -> (i32, i32) {
    %c0_i32 = arith.constant 0 : i32
    %c0_i32_0 = arith.constant 0 : i32
    return %arg0, %c0_i32 : i32, i32
  }
}

</mosaic_0001>

<bundles_post_ra>
// kernel: tpu_custom_call.1
= control target key start
LH: loop header
LB: loop body
LE: loop exit
PB: predicated region body
PF: predicated region fallthrough
CT: control target
= control target key end

     0   :  { %16 = vsyncpa [#allocation4], 0  ;;  %s862_s0 = inlined_call_operand.vmem [shape: f32[32,1], index: 0, kind: input, shape index: {}]   ;;  %s863_s1 = inlined_call_operand.vmem [shape: f32[1,16], index: 1, kind: input, shape index: {}]   ;;  %s864_s2 = inlined_call_operand.vmem [shape: f32[1,16], index: 2, kind: input, shape index: {}]   ;;  %s865_s3 = inlined_call_operand.vmem [shape: f32[1,16], index: 3, kind: input, shape index: {}]   ;;  %s866_s4 = inlined_call_operand.vmem [shape: f32[1,16], index: 4, kind: input, shape index: {}]   ;;  %s867_s5 = inlined_call_operand.hbm [shape: f32[3,16,32], index: 5, kind: input, shape index: {}]   ;;  %s868_s6 = inlined_call_operand.vmem [shape: f32[1,32], index: 6, kind: input, shape index: {}]   ;;  %s869_s7 = inlined_call_operand.hbm [shape: f32[4,32,64], index: 7, kind: input, shape index: {}]   ;;  %s870_s8 = inlined_call_operand.vmem [shape: f32[1,64], index: 8, kind: input, shape index: {}]   ;;  %s871_s9 = inlined_call_operand.hbm [shape: f32[64,128], index: 9, kind: input, shape index: {}]   ;;  %s872_s10 = inlined_call_operand.vmem [shape: f32[1,128], index: 10, kind: input, shape index: {}]   ;;  %s873_s11 = inlined_call_operand.hbm [shape: f32[2,128], index: 11, kind: output, shape index: {}]  }
   0x1   :  { %17 = vsyncpa [#allocation7], 0 }
   0x2   :  { %18 = vsyncpa [#allocation5], 0  ;;  %s48_s19 = sshll.u32 %s869_s7, 4  ;;  %s707_s20 = smov [#allocation6]   ;;  %s49_s19 = int_to_ptr.hbm [resolvable:$true] %s48_s19 }
   0x3   :  { %s50_s21 = sshll.u32 %s707_s20, 4  ;;  %s33_s24 = sshll.u32 %s867_s5, 4  ;;  %s51_s21 = int_to_ptr.vmem [resolvable:$true] %s50_s21  ;;  %s34_s24 = int_to_ptr.hbm [resolvable:$true] %s33_s24 }
   0x4   :  { %s708_s25 = smov 128   ;;  %s709_s26 = smov 8  }
   0x5   :  { %56 = dma.hbm_to_vmem [thread:$0]  %s49_s19, 2048, %s51_s21, [#allocation7], %s708_s25, %s708_s25, %s709_s26  }
   0x6   :  { %s710_s27 = smov [#allocation3]   ;;  %s63_s12 = sshll.u32 %s871_s9, 4  ;;  %s64_s12 = int_to_ptr.hbm [resolvable:$true] %s63_s12 }
   0x7   :  { %s35_s28 = sshll.u32 %s710_s27, 4  ;;  %s711_s7 = smov [#allocation8]   ;;  %s36_s28 = int_to_ptr.vmem [resolvable:$true] %s35_s28 }
   0x8   :  { %41 = dma.hbm_to_vmem [thread:$0]  %s34_s24, 768, %s36_s28, [#allocation4], %s708_s25, %s708_s25, %s709_s26  }
   0x9   :  { %s65_s13 = sshll.u32 %s711_s7, 4  ;;  %s66_s13 = int_to_ptr.vmem [resolvable:$true] %s65_s13 }
   0xa   :  { %71 = dma.hbm_to_vmem [thread:$0]  %s64_s12, 1024, %s66_s13, [#allocation7], %s708_s25, %s708_s25, %s709_s26  }
   0xb   :  { %701 = dma.done.wait [#allocation4], 768  }
   0xc   :  { %702 = vsyncadd [#allocation4], 4294966528 }
   0xd   :  { %703 = dma.done.wait [#allocation7], 3072  }
   0xe   :  { %704 = vsyncadd [#allocation7], 4294964224  ;;  %v86_v0 = vlaneseq  ;;  %v712_v1 = vmov 0   ;;  %v115_v7 = vld [vmem:[%s862_s0] ss:$2 sm:$0xff]  ;;  %v273_v40 = vld [vmem:[#allocation3 + $0x8] sm:$0xff] }
   0xf   :  { %595 = vset.pattern.permute.xlu1 %v712_v1  ;;  %597 = vset.pattern.permute.xlu0 %v712_v1  ;;  %v575_v8 = vld [vmem:[%s862_s0 + $0x1] ss:$2 sm:$0xff]  ;;  %v576_v10 = vld [vmem:[%s862_s0 + $0x11] ss:$2 sm:$0xff]  ;;  %v574_v13 = vld [vmem:[%s862_s0 + $0x10] ss:$2 sm:$0xff] }
  0x10   :  { %v783_v2 = vshrl.u32 %v86_v0, 7  ;;  %596 = vset.pattern.permute.xlu2 %v712_v1  ;;  %161 = vperm.xlu1 %595, %v115_v7   ;;  %v124_v14 = vrot.slane %v575_v8, 7  ;;  %v125_v16 = vrot.slane %v576_v10, 7  ;;  %v133_v19 = vrot.slane %v115_v7, 1  ;;  %v276_v37 = vld [vmem:[#allocation3 + $0x18] sm:$0xff]  ;;  %v275_v38 = vld [vmem:[#allocation3 + $0x10] sm:$0xff] }
  0x11   :  { %178 = vperm.xlu2 %596, %v575_v8   ;;  %v134_v20 = vrot.slane %v574_v13, 1  ;;  %298 = vmatpush.msra.mxu0 %v276_v37  ;;  %v338_v41 = vld [vmem:[#allocation3 + $0x28] sm:$0xff]  ;;  %v272_v42 = vld [vmem:[#allocation3] sm:$0xff]  ;;  %v598_v46 = vld [vmem:[%s863_s1] ss:$0 sm:$0xff]  ;;  %vm277_vm14 = vcmask 130048  }
  0x12   :  { %v89_v3 = vmul.u32 2, %v783_v2  ;;  %v787_v4 = vadd.s32 8, %v783_v2  ;;  %vm126_vm2 = vcmp.lt.s32.totalorder %v783_v2, 1  ;;  %vm135_vm6 = vcmp.lt.s32.totalorder %v783_v2, 7  ;;  %327 = vmatpush.msra.mxu1 %v273_v40  ;;  %359 = vmatpush.msra.mxu2 %v338_v41  ;;  %v337_v43 = vld [vmem:[#allocation3 + $0x20] sm:$0xff]  ;;  %v452_v40 = vld [vmem:[#allocation6 + $0x48] sm:$0xff] }
  0x13   :  { %v128_v24 = vsel %vm126_vm2, %v125_v16, %v124_v14  ;;  %v137_v29 = vsel %vm135_vm6, %v134_v20, %v133_v19  ;;  %v127_v32 = vsel %vm126_vm2, %v124_v14, %v125_v16  ;;  %v136_v34 = vsel %vm135_vm6, %v133_v19, %v134_v20  ;;  %299 = vmatpush.msra.mxu0 %v275_v38  ;;  %v599_v47 = vld [vmem:[%s864_s2] ss:$0 sm:$0xff]  ;;  %v453_v37 = vld [vmem:[#allocation6 + $0x50] sm:$0xff]  ;;  %s713_s28 = smov [#allocation9]   ;;  %s563_s7 = sshll.u32 %s873_s11, 4  ;;  %s564_s7 = int_to_ptr.hbm [resolvable:$true] %s563_s7 }
  0x14   :  { %vm91_vm0 = vcmp.lt.s32.totalorder %v89_v3, 0  ;;  %v92_v5 = vsub.s32 0, %v89_v3  ;;  %v90_v6 = vmul.u32 2, %v787_v4  ;;  %328 = vmatpush.msra.mxu1 %v272_v42  ;;  %360 = vmatpush.msra.mxu2 %v337_v43  ;;  %v600_v50 = vld [vmem:[%s865_s3] ss:$0 sm:$0xff]  ;;  %v487_v38 = vld [vmem:[#allocation6 + $0x70] sm:$0xff] }
  0x15   :  { %v395_v41 = vld [vmem:[#allocation6 + $0x20] sm:$0xff]  ;;  %s561_s29 = sshll.u32 %s713_s28, 4  ;;  %s562_s29 = int_to_ptr.vmem [resolvable:$true] %s561_s29 }
  0x16   :  { %v93_v9 = vsel %vm91_vm0, %v92_v5, %v89_v3  ;;  %vm98_vm1 = vcmp.lt.s32.totalorder %v90_v6, 0  ;;  %v99_v12 = vsub.s32 0, %v90_v6  ;;  %v601_v3 = vld [vmem:[%s866_s4] ss:$0 sm:$0xff] }
  0x17   :  { %v95_v11 = vand.u32 15, %v93_v9  ;;  %v451_v42 = vld [vmem:[#allocation6 + $0x40] sm:$0xff] }
  0x18   :  { %v100_v17 = vsel %vm98_vm1, %v99_v12, %v90_v6  ;;  %166 = vperm.xlu1 %595, %v574_v13   ;;  %v485_v43 = vld [vmem:[#allocation6 + $0x60] sm:$0xff] }
  0x19   :  { %v96_v15 = vsub.s32 0, %v95_v11  ;;  %v102_v18 = vand.u32 15, %v100_v17  ;;  %183 = vperm.xlu2 %596, %v576_v10   ;;  %v228_v17 = vand.u32 7, %v783_v2  ;;  %v486_v2 = vld [vmem:[#allocation6 + $0x68] sm:$0xff] }
  0x1b   :  { %v97_v21 = vsel %vm91_vm0, %v96_v15, %v95_v11  ;;  %v103_v23 = vsub.s32 0, %v102_v18  ;;  %vm248_vm15 = vcmp.eq.s32.totalorder %v228_v17, 0  ;;  %vm260_vm0 = vcmp.eq.s32.totalorder %v228_v17, 7  ;;  %v522_v17 = vld [vmem:[#allocation8 + $0x18] sm:$0xff] }
  0x1c   :  { %vm105_vm3 = vcmp.ne.s32.totalorder %v97_v21, 0  ;;  %vm107_vm4 = vcmp.lt.s32.totalorder %v97_v21, 0  ;;  %v111_v22 = vadd.s32 16, %v97_v21 }
  0x1d   :  { %vm109_vm5 = vmand %vm107_vm4, %vm105_vm3  ;;  %v104_v26 = vsel %vm98_vm1, %v103_v23, %v102_v18  ;;  %vm531_vm4 = vcmask 523264  }
  0x1e   :  { %v113_v25 = vsel %vm109_vm5, %v111_v22, %v97_v21  ;;  %vm106_vm8 = vcmp.ne.s32.totalorder %v104_v26, 0  ;;  %vm108_vm9 = vcmp.lt.s32.totalorder %v104_v26, 0  ;;  %v112_v27 = vadd.s32 16, %v104_v26 }
  0x1f   :  { %vm122_vm7 = vcmp.eq.s32.totalorder %v113_v25, 0  ;;  %vm110_vm10 = vmand %vm108_vm9, %vm106_vm8  ;;  %vm131_vm13 = vcmp.eq.s32.totalorder %v113_v25, 14 }
  0x20   :  { %v129_v28 = vsel %vm122_vm7, 0.0, %v128_v24  ;;  %v114_v30 = vsel %vm110_vm10, %v112_v27, %v104_v26  ;;  %v138_v35 = vsel %vm131_vm13, 0.0, %v136_v34  ;;  %v398_v34 = vld [vmem:[#allocation6 + $0x38] sm:$0xff] }
  0x21   :  { %146 = vperm.xlu0 %597, %v129_v28   ;;  %vm132_vm11 = vcmp.eq.s32.totalorder %v114_v30, 14  ;;  %vm123_vm12 = vcmp.eq.s32.totalorder %v114_v30, 0  ;;  %414 = vmatpush.msra.mxu3 %v398_v34 }
  0x22   :  { %v139_v31 = vsel %vm132_vm11, 0.0, %v137_v29  ;;  %v130_v33 = vsel %vm123_vm12, 0.0, %v127_v32  ;;  %v235_v29 = vand.u32 7, %v787_v4  ;;  %v397_v4 = vld [vmem:[#allocation6 + $0x30] sm:$0xff] }
  0x23   :  { %211 = vperm.xlu1 %595, %v139_v31   ;;  %415 = vmatpush.msra.mxu3 %v397_v4 }
  0x24   :  { %vm249_vm1 = vcmp.eq.s32.totalorder %v235_v29, 0  ;;  %vm261_vm3 = vcmp.eq.s32.totalorder %v235_v29, 7 }
  0x29   :  { %151 = vperm.xlu0 %597, %v130_v33  }
  0x31   :  { %206 = vperm.xlu0 %597, %v138_v35   ;;  %v454_v35 = vld [vmem:[#allocation6 + $0x58] sm:$0xff] }
  0x32   :  { %470 = vmatpush.msrb.mxu0 %v454_v35 }
  0x34   :  { %471 = vmatpush.msrb.mxu0 %v453_v37 }
  0x36   :  { %472 = vmatpush.msrb.mxu0 %v452_v40 }
  0x38   :  { %473 = vmatpush.msrb.mxu0 %v451_v42 }
  0x6b   :  { %v179_v39 = vpop.permute.xlu2 %178 }
  0x6c   :  { %v189_v62 = vmul.f32 %v600_v50, %v179_v39  ;;  %v200_v63 = vmul.f32 %v599_v47, %v179_v39  ;;  %v396_v39 = vld [vmem:[#allocation6 + $0x28] sm:$0xff] }
  0x6d   :  { %416 = vmatpush.msra.mxu3 %v396_v39 }
  0x6f   :  { %417 = vmatpush.msra.mxu3 %v395_v41 }
  0x73   :  { %v184_v48 = vpop.permute.xlu2 %183 }
  0x74   :  { %v201_v52 = vmul.f32 %v599_v47, %v184_v48  ;;  %v190_v59 = vmul.f32 %v600_v50, %v184_v48 }
  0x82   :  { %v162_v36 = vpop.permute.xlu1 %161 }
  0x83   :  { %v172_v53 = vmul.f32 %v599_v47, %v162_v36  ;;  %v198_v0 = vmul.f32 %v598_v46, %v162_v36  ;;  %v488_v36 = vld [vmem:[#allocation6 + $0x78] sm:$0xff] }
  0x84   :  { %504 = vmatpush.msrb.mxu1 %v488_v36 }
  0x85   :  { %v202_v9 = vadd.f32 %v200_v63, %v198_v0 }
  0x86   :  { %505 = vmatpush.msrb.mxu1 %v487_v38 }
  0x88   :  { %506 = vmatpush.msrb.mxu1 %v486_v2 }
  0x8a   :  { %v167_v44 = vpop.permute.xlu1 %166  ;;  %507 = vmatpush.msrb.mxu1 %v485_v43 }
  0x8b   :  { %v199_v51 = vmul.f32 %v598_v46, %v167_v44  ;;  %v173_v55 = vmul.f32 %v599_v47, %v167_v44  ;;  %v388_v44 = vld [vmem:[#allocation6 + $0x18] sm:$0xff]  ;;  %v386_v47 = vld [vmem:[#allocation6 + $0x8] sm:$0xff] }
  0x8c   :  { %437 = vmatpush.msrb.mxu3 %v388_v44 }
  0x8d   :  { %v203_v60 = vadd.f32 %v201_v52, %v199_v51  ;;  %v602_v51 = vld [vmem:[%s868_s6] ss:$0 sm:$0xff] }
  0x93   :  { %v147_v45 = vpop.permute.xlu0 %146 }
  0x94   :  { %v157_v56 = vmul.f32 %v598_v46, %v147_v45 }
  0x95   :  { %v212_v49 = vpop.permute.xlu1 %211 }
  0x96   :  { %v215_v57 = vmul.f32 %v600_v50, %v212_v49  ;;  %v174_v1 = vadd.f32 %v172_v53, %v157_v56  ;;  %v385_v49 = vld [vmem:[#allocation6] sm:$0xff] }
  0x98   :  { %v217_v5 = vadd.f32 %v215_v57, %v203_v60  ;;  %v191_v10 = vadd.f32 %v189_v62, %v174_v1 }
  0x9a   :  { %v219_v11 = vadd.f32 %v601_v3, %v217_v5  ;;  %v196_v16 = vadd.f32 %v601_v3, %v191_v10 }
  0x9b   :  { %v152_v54 = vpop.permute.xlu0 %151 }
  0x9c   :  { %v158_v58 = vmul.f32 %v598_v46, %v152_v54  ;;  %v387_v46 = vld [vmem:[#allocation6 + $0x10] sm:$0xff] }
  0x9d   :  { %438 = vmatpush.msrb.mxu3 %v387_v46 }
  0x9e   :  { %v175_v61 = vadd.f32 %v173_v55, %v158_v58 }
  0x9f   :  { %439 = vmatpush.msrb.mxu3 %v386_v47 }
  0xa0   :  { %v192_v6 = vadd.f32 %v190_v59, %v175_v61 }
  0xa1   :  { %440 = vmatpush.msrb.mxu3 %v385_v49 }
  0xa2   :  { %v197_v7 = vadd.f32 %v601_v3, %v192_v6 }
  0xa3   :  { %v207_v8 = vpop.permute.xlu0 %206 }
  0xa4   :  { %v214_v12 = vmul.f32 %v600_v50, %v207_v8  ;;  %v221_v13 = vmax.f32 %v197_v7, %v219_v11 }
  0xa6   :  { %v216_v14 = vadd.f32 %v214_v12, %v202_v9  ;;  %v223_v18 = vmax.f32 %v221_v13, 0.0  ;;  %v526_v13 = vld [vmem:[#allocation8 + $0x38] sm:$0xff] }
  0xa7   :  { %543 = vmatpush.msrb.mxu2 %v526_v13 }
  0xa8   :  { %v218_v15 = vadd.f32 %v601_v3, %v216_v14  ;;  %v251_v22 = vrot.slane %v223_v18, 7  ;;  %v263_v24 = vrot.slane %v223_v18, 1  ;;  %v525_v14 = vld [vmem:[#allocation8 + $0x30] sm:$0xff] }
  0xa9   :  { %544 = vmatpush.msrb.mxu2 %v525_v14 }
  0xaa   :  { %v220_v19 = vmax.f32 %v196_v16, %v218_v15  ;;  %v524_v15 = vld [vmem:[#allocation8 + $0x28] sm:$0xff]  ;;  %v523_v16 = vld [vmem:[#allocation8 + $0x20] sm:$0xff] }
  0xab   :  { %545 = vmatpush.msrb.mxu2 %v524_v15 }
  0xac   :  { %v222_v20 = vmax.f32 %v220_v19, 0.0  ;;  %v520_v19 = vld [vmem:[#allocation8 + $0x8] sm:$0xff] }
  0xad   :  { %546 = vmatpush.msrb.mxu2 %v523_v16 }
  0xae   :  { %577 = vmatmul.msk.f32.vlgmr.msra.gmra.mxu0 %vm277_vm14, %v222_v20  ;;  %v250_v21 = vrot.slane %v222_v20, 7  ;;  %v262_v23 = vrot.slane %v222_v20, 1  ;;  %v519_v20 = vld [vmem:[#allocation8] sm:$0xff] }
  0xaf   :  { %547 = vmatpush.msrb.mxu2 %v522_v17 }
  0xb0   :  { %v253_v25 = vsel %vm126_vm2, %v251_v22, %v250_v21  ;;  %v264_v26 = vsel %vm135_vm6, %v262_v23, %v263_v24  ;;  %v252_v30 = vsel %vm126_vm2, %v250_v21, %v251_v22  ;;  %v265_v31 = vsel %vm135_vm6, %v263_v24, %v262_v23 }
  0xb1   :  { %v258_v27 = vsel %vm248_vm15, 0.0, %v253_v25  ;;  %v270_v28 = vsel %vm260_vm0, 0.0, %v264_v26  ;;  %v259_v32 = vsel %vm249_vm1, 0.0, %v252_v30  ;;  %v271_v33 = vsel %vm261_vm3, 0.0, %v265_v31  ;;  %v603_v26 = vld [vmem:[%s870_s8] ss:$0 sm:$0xff] }
  0xb2   :  { %579 = vmatmul.msk.f32.vlgmr.msra.gmra.mxu1 %vm277_vm14, %v258_v27  ;;  %581 = vmatmul.msk.f32.vlgmr.msra.gmra.mxu2 %vm277_vm14, %v270_v28  ;;  %vm378_vm2 = vcmask 261120   ;;  %v604_v31 = vld [vmem:[%s872_s10] ss:$0 sm:$0xff] }
  0xb6   :  { %578 = vmatmul.msk.f32.gmra.mxu0 %vm277_vm14, %v223_v18  ;;  %v521_v18 = vld [vmem:[#allocation8 + $0x10] sm:$0xff] }
  0xb7   :  { %548 = vmatpush.msrb.mxu2 %v521_v18 }
  0xb9   :  { %549 = vmatpush.msrb.mxu2 %v520_v19 }
  0xba   :  { %580 = vmatmul.msk.f32.gmra.mxu1 %vm277_vm14, %v259_v32  ;;  %582 = vmatmul.msk.f32.gmra.mxu2 %vm277_vm14, %v271_v33 }
  0xbb   :  { %550 = vmatpush.msrb.mxu2 %v519_v20 }
 0x12b   :  { %v301_v48 = vpop.f32.mrf.mxu0 }
 0x12f   :  { %v330_v45 = vpop.f32.mrf.mxu1 }
 0x130   :  { %v331_v50 = vadd.f32 %v330_v45, %v301_v48 }
 0x133   :  { %v304_v57 = vpop.f32.mrf.mxu0 }
 0x135   :  { %v362_v52 = vpop.f32.mrf.mxu2 }
 0x136   :  { %v368_v53 = vadd.f32 %v362_v52, %v331_v50 }
 0x137   :  { %v333_v55 = vpop.f32.mrf.mxu1 }
 0x138   :  { %v374_v54 = vadd.f32 %v602_v51, %v368_v53  ;;  %v334_v58 = vadd.f32 %v333_v55, %v304_v57 }
 0x13a   :  { %v376_v56 = vmax.f32 %v374_v54, 0.0 }
 0x13c   :  { %379 = vst.msk [vmem:[#allocation2] sm:$0xff] %vm378_vm2, %v376_v56 }
 0x13d   :  { %v365_v59 = vpop.f32.mrf.mxu2 }
 0x13e   :  { %v369_v60 = vadd.f32 %v365_v59, %v334_v58 }
 0x140   :  { %v375_v61 = vadd.f32 %v602_v51, %v369_v60 }
 0x142   :  { %v377_v62 = vmax.f32 %v375_v61, 0.0 }
 0x144   :  { %380 = vst.msk [vmem:[#allocation2 + $0x8] sm:$0xff] %vm378_vm2, %v377_v62 }
 0x14b   :  { %v390_v63 = vld [vmem:[#allocation2 + $0x2] ss:$8 sm:$0x3]  ;;  %v392_v0 = vld [vmem:[#allocation2 + $0x3] ss:$8 sm:$0x3] }
 0x14c   :  { %v393_v1 = vmax.f32 %v390_v63, %v392_v0  ;;  %v446_v3 = vld [vmem:[#allocation2 + $0x4] ss:$8 sm:$0x3]  ;;  %v448_v5 = vld [vmem:[#allocation2 + $0x5] ss:$8 sm:$0x3] }
 0x14d   :  { %v449_v6 = vmax.f32 %v446_v3, %v448_v5  ;;  %v480_v7 = vld [vmem:[#allocation2 + $0x6] ss:$8 sm:$0x3]  ;;  %v482_v8 = vld [vmem:[#allocation2 + $0x7] ss:$8 sm:$0x3] }
 0x14e   :  { %583 = vmatmul.msk.f32.vlgmr.msra.gmra.mxu3 %vm378_vm2, %v393_v1  ;;  %v483_v9 = vmax.f32 %v480_v7, %v482_v8  ;;  %v381_v10 = vld [vmem:[#allocation2] ss:$8 sm:$0x3]  ;;  %v383_v11 = vld [vmem:[#allocation2 + $0x1] ss:$8 sm:$0x3] }
 0x14f   :  { %585 = vmatmul.msk.f32.vlgmr.msrb.gmra.mxu0 %vm378_vm2, %v449_v6  ;;  %v384_v12 = vmax.f32 %v381_v10, %v383_v11 }
 0x150   :  { %586 = vmatmul.msk.f32.vlgmr.msrb.gmra.mxu1 %vm378_vm2, %v483_v9 }
 0x156   :  { %584 = vmatmul.msk.f32.vlgmr.msrb.gmra.mxu3 %vm378_vm2, %v384_v12 }
 0x1cc   :  { %v475_v24 = vpop.f32.mrf.mxu0 }
 0x1cd   :  { %v509_v27 = vpop.f32.mrf.mxu1 }
 0x1d1   :  { %v419_v21 = vpop.f32.mrf.mxu3 }
 0x1d9   :  { %v442_v22 = vpop.f32.mrf.mxu3 }
 0x1da   :  { %v443_v23 = vadd.f32 %v442_v22, %v419_v21 }
 0x1dc   :  { %v478_v25 = vadd.f32 %v475_v24, %v443_v23 }
 0x1de   :  { %v512_v28 = vadd.f32 %v509_v27, %v478_v25 }
 0x1e0   :  { %v517_v29 = vadd.f32 %v603_v26, %v512_v28 }
 0x1e2   :  { %v518_v30 = vmax.f32 %v517_v29, 0.0 }
 0x1e4   :  { %587 = vmatmul.msk.f32.vlgmr.msrb.gmra.mxu2 %vm531_vm4, %v518_v30 }
 0x267   :  { %v552_v32 = vpop.f32.mrf.mxu2 }
 0x268   :  { %v553_v33 = vadd.f32 %v604_v31, %v552_v32 }
 0x26a   :  { %555 = vst [vmem:[#allocation9] sm:$0x3] %v553_v33 }
 0x26b   :  { %566 = dma.vmem_to_hbm [thread:$0]  %s562_s29, 32, %s564_s7, [#allocation5]  }
 0x26c   :  { %705 = dma.done.wait [#allocation5], 32  }
 0x26d   :  { %706 = vsyncadd [#allocation5], 4294967264 }
 0x26e   :  { %571 = vsyncpa [#allocation4], 1 }
 0x26f   :  { %572 = vsyncpa [#allocation7], 1 }
 0x270   :  { %573 = vsyncpa [#allocation5], 1 }

</bundles_post_ra>
